<compile_context>
chip_gen: v5e
topology: v5e:2x2
jax: 0.10.0
libtpu: 0.0.40
codegen_flags: <defaults>
</compile_context>

<pallas_src>
import jax
import jax.numpy as jnp
from jax.experimental import pallas as pl
from jax.experimental.pallas import tpu as pltpu

_TARGET_TILE_BYTES = 8 * 1024 * 1024   # ~8 MiB per block (v6e/v7x sweet spot)
_VMEM_LIMIT_BYTES = 48 << 20           # 4 x 8 MiB double-buffered + headroom,
                                       # fits v7x (64 MiB) and v5e/v6e (128 MiB)
_MIN_SPLIT_BYTES = 512 * 1024          # above this, force >=2 grid steps (v7x: 2 TCs)


def _residual_block_kernel(x_ref, o_ref):
    # blocks(x) = Identity, residual = Identity(x)  ->  out = x + x = 2 * x.
    # Single load + one VPU multiply, lane-dense unmasked stores.
    o_ref[...] = x_ref[...] * 2


def _cdiv(a, b):
    return (a + b - 1) // b


def _round_up(a, b):
    return _cdiv(a, b) * b


def _choose_lane(total):
    # Largest lane-dense width (multiple of 128) that divides the flat size,
    # so we can skip pad + slice entirely in the common case.
    for lane in (512, 256, 128):
        if total % lane == 0:
            return lane, False
    return 512, True


def residual_block_forward(x, in_channels, out_channels):
    """Forward pass of ResidualBlock. x: NCHW array."""
    # should_apply_shortcut only selects between two Identity modules, so the
    # numerical result is identical either way.
    del in_channels, out_channels

    orig_shape = x.shape
    dtype = x.dtype
    total = x.size
    if total == 0:
        return x

    itemsize = jnp.dtype(dtype).itemsize
    sublane = max(8, 32 // itemsize)   # 8 for f32, 16 for bf16, 32 for int8/fp8

    lane, needs_pad = _choose_lane(total)
    rows = _cdiv(total, lane)

    flat = x.reshape(-1)
    if needs_pad:
        # TODO(synk): only reached when the flat size is not a multiple of 128;
        # in that case one pad + one slice (extra HBM passes) are unavoidable.
        flat = jnp.pad(flat, (0, rows * lane - total))

    x2d = flat.reshape(rows, lane)

    # Tile rows: big blocks to amortize per-grid-step overhead, sublane-aligned.
    target_rows = max(
        sublane, (_TARGET_TILE_BYTES // (lane * itemsize)) // sublane * sublane
    )

    if rows <= target_rows:
        if rows * lane * itemsize >= _MIN_SPLIT_BYTES and rows >= 2 * sublane:
            # Split mid-size inputs into (at least) 2 parallel tiles so v7x can
            # use both TensorCores instead of a single-tile grid on one TC.
            tile_rows = _round_up(_cdiv(rows, 2), sublane)
        else:
            # Full-extent block: satisfies the (8,128) rule even when rows < 8.
            tile_rows = rows
    else:
        tile_rows = target_rows

    grid_len = _cdiv(rows, tile_rows)
    # Prefer an even grid length (odd leaves one v7x TensorCore idle on the
    # last step). Only adopt the adjustment if it actually yields an even grid.
    if grid_len > 1 and grid_len % 2 == 1:
        alt_rows = _round_up(_cdiv(rows, grid_len + 1), sublane)
        if alt_rows >= sublane and _cdiv(rows, alt_rows) % 2 == 0:
            tile_rows = alt_rows
            grid_len = _cdiv(rows, alt_rows)

    out2d = pl.pallas_call(
        _residual_block_kernel,
        out_shape=jax.ShapeDtypeStruct((rows, lane), dtype),
        grid=(grid_len,),
        in_specs=[pl.BlockSpec((tile_rows, lane), lambda i: (i, 0))],
        out_specs=pl.BlockSpec((tile_rows, lane), lambda i: (i, 0)),
        compiler_params=pltpu.CompilerParams(
            dimension_semantics=("parallel",),
            vmem_limit_bytes=_VMEM_LIMIT_BYTES,
        ),
        cost_estimate=pl.CostEstimate(
            flops=total,
            bytes_accessed=2 * total * itemsize,
            transcendentals=0,
        ),
    )(x2d)

    out_flat = out2d.reshape(-1)
    if needs_pad:
        out_flat = out_flat[:total]
    return out_flat.reshape(orig_shape)


if __name__ == "__main__":
    key = jax.random.PRNGKey(0)
    # Small shapes consistent with the module: batch=2, channels=4, spatial=16.
    in_channels = 4
    out_channels = 4  # Identity blocks/shortcut -> channel count unchanged.
    x = jax.random.normal(key, (2, in_channels, 16, 16), dtype=jnp.float32)

    fwd = jax.jit(residual_block_forward, static_argnums=(1, 2))
    out = jax.block_until_ready(fwd(x, in_channels, out_channels))

    # Reference: forward is x + x.
    ref = x + x
    assert out.shape == x.shape and out.dtype == x.dtype
    assert jnp.allclose(out, ref, atol=1e-6, rtol=1e-6)

    print("KERNEL_OK")
</pallas_src>

<mosaic_0001>
module attributes {stable_mosaic.version = 11 : i64} {
  func.func @_residual_block_kernel(%arg0: i32, %arg1: memref<4x512xf32, #tpu.memory_space<vmem>>, %arg2: memref<4x512xf32, #tpu.memory_space<vmem>>) attributes {dimension_semantics = [#tpu.dimension_semantics<parallel>], iteration_bounds = array<i64: 1>, scalar_prefetch = 0 : i64, scratch_operands = 0 : i64, tpu.core_type = #tpu.core_type<tc>, window_params = [{transform_indices = @transform_0, window_bounds = array<i64: 4, 512>}, {transform_indices = @transform_1, window_bounds = array<i64: 4, 512>}]} {
    %c0 = arith.constant 0 : index
    %c0_0 = arith.constant 0 : index
    %0 = vector.load %arg1[%c0, %c0_0] : memref<4x512xf32, #tpu.memory_space<vmem>>, vector<4x512xf32>
    %cst = arith.constant 2.000000e+00 : f32
    %1 = vector.broadcast %cst : f32 to vector<4x512xf32>
    %2 = arith.mulf %0, %1 : vector<4x512xf32>
    %c0_1 = arith.constant 0 : index
    %c0_2 = arith.constant 0 : index
    %3 = vector.load %arg2[%c0_1, %c0_2] : memref<4x512xf32, #tpu.memory_space<vmem>>, vector<4x512xf32>
    tpu.vector_store %arg2[%c0_1, %c0_2], %2 {strides = array<i32>} : memref<4x512xf32, #tpu.memory_space<vmem>>, vector<4x512xf32>,
    return
  }
  func.func @transform_0(%arg0: i32) -> (i32, i32) {
    %c0_i32 = arith.constant 0 : i32
    %c0_i32_0 = arith.constant 0 : i32
    return %arg0, %c0_i32 : i32, i32
  }
  func.func @transform_1(%arg0: i32) -> (i32, i32) {
    %c0_i32 = arith.constant 0 : i32
    %c0_i32_0 = arith.constant 0 : i32
    return %arg0, %c0_i32 : i32, i32
  }
}

</mosaic_0001>

<bundles_post_ra>
// kernel: residual_block_forward.1
= control target key start
LH: loop header
LB: loop body
LE: loop exit
PB: predicated region body
PF: predicated region fallthrough
CT: control target
= control target key end

     0   :  { %s40_s0 = inlined_call_operand.vmem [shape: f32[4,512], index: 0, kind: input, shape index: {}]   ;;  %s41_s1 = inlined_call_operand.vmem [shape: f32[4,512], index: 1, kind: output, shape index: {}]  }
   0x1   :  { %v8_v0 = vld [vmem:[%s40_s0] sm:$0xff]  ;;  %v9_v1 = vld [vmem:[%s40_s0 + $0x8] sm:$0xff] }
   0x2   :  { %v10_v2 = vmul.f32 2.0, %v8_v0  ;;  %v11_v3 = vmul.f32 2.0, %v9_v1 }
   0x4   :  { %12 = vst [vmem:[%s41_s1] sm:$0xff] %v10_v2 }
   0x5   :  { %13 = vst [vmem:[%s41_s1 + $0x8] sm:$0xff] %v11_v3 }

</bundles_post_ra>
